<compile_context>
chip_gen: v7x
topology: tpu7x:2x2x1
jax: 0.10.0
libtpu: 0.0.40
codegen_flags: <defaults>
</compile_context>

<pallas_src>
import functools

import jax
import jax.numpy as jnp
from jax.experimental import pallas as pl
from jax.experimental.pallas import tpu as pltpu


def _round_up(x, m):
    return ((x + m - 1) // m) * m


def _vmem_capacity_bytes():
    """Physical VMEM per core; falls back to the smallest generation (v7x: 64 MiB)."""
    try:
        cap = getattr(pltpu.get_tpu_info(), "vmem_capacity_bytes", None)
        if cap:
            return int(cap)
    except Exception:
        pass
    return 64 * 1024 * 1024


def _resident_spec(block_shape, index_map):
    """BlockSpec for operands whose block never changes across the grid.

    Request single-buffering (no point double-buffering a constant tile);
    fall back to a plain BlockSpec if this JAX build lacks pipeline_mode.
    """
    try:
        return pl.BlockSpec(block_shape, index_map, pipeline_mode=pl.Buffered(1))
    except (TypeError, AttributeError):
        return pl.BlockSpec(block_shape, index_map)


def _output_head_kernel(*refs, apply_bn_relu: bool):
    """Fused [BN affine + ReLU] + global-avg-pool + FC for one batch tile.

    x tile layout is (TILE_N, C, HW): HW on lanes, C on sublanes.
      x_ref:     (TILE_N, C, HW)   native dtype (f32 or bf16)
      scale_ref: (1, C, 1)  f32    gamma / sqrt(running_var + eps)   [BN path]
      shift_ref: (1, C, 1)  f32    beta - running_mean * scale       [BN path]
      w_ref:     (C, NC_PAD) bf16  fc_weight.T / HW, zero-padded columns
      b_ref:     (1, NC_PAD) f32   fc bias, zero-padded
      out_ref:   (TILE_N, NC_PAD)  f32
    """
    if apply_bn_relu:
        x_ref, scale_ref, shift_ref, w_ref, b_ref, out_ref = refs
    else:
        x_ref, w_ref, b_ref, out_ref = refs

    x = x_ref[...].astype(jnp.float32)                      # (TILE_N, C, HW)

    if apply_bn_relu:
        x = x * scale_ref[...] + shift_ref[...]              # per-channel affine
        x = jnp.maximum(x, 0.0)                              # ReLU

    # Global SUM over H*W (cross-lane reduction); 1/HW is folded into w_ref.
    pooled = jnp.sum(x, axis=2)                              # (TILE_N, C) f32

    # FC on the MXU: bf16 operands, f32 accumulate, lane-dense padded output.
    out = jnp.dot(pooled.astype(w_ref.dtype), w_ref[...],
                  preferred_element_type=jnp.float32) + b_ref[...]
    out_ref[...] = out.astype(out_ref.dtype)


def output_layer_forward(x_nchw, params, *, resnet_version: int, tile_n=None,
                         fc_weight_dtype=jnp.bfloat16):
    """x_nchw: (N, C, H, W), f32 or bf16. Returns (N, num_classes) float32."""
    N, C, H, W = x_nchw.shape
    HW = H * W
    num_classes = params["fc_w"].shape[0]
    NC_PAD = max(128, _round_up(num_classes, 128))
    apply_bn_relu = (resnet_version == 2)

    # ---- layout: contiguous (free) reshape only; no transpose, native dtype ----
    x = x_nchw.reshape(N, C, HW)

    # ---- generation-aware VMEM budget ----
    vmem_cap = _vmem_capacity_bytes()
    vmem_limit = int(vmem_cap * 0.8)            # headroom for compiler scratch

    itemsize = jnp.dtype(x.dtype).itemsize
    sub_granule = max(8, 32 // itemsize)        # sublane pad granule (8 f32 / 16 bf16)
    # Per-sample VMEM footprint of one x row, including lane/sublane padding
    # (e.g. HW=49 -> 128 lanes matters for real ResNet heads).
    per_sample_bytes = _round_up(C, sub_granule) * _round_up(HW, 128) * itemsize

    # Resident (single-buffered) params.
    resident_bytes = (
        _round_up(C, 8) * NC_PAD * jnp.dtype(fc_weight_dtype).itemsize   # w_pad
        + 8 * NC_PAD * 4                                                 # b_pad
        + (2 * _round_up(C, 8) * 128 * 4 if apply_bn_relu else 0))       # scale/shift

    if tile_n is None:
        avail = max(4 * 1024 * 1024, vmem_limit - resident_bytes - (2 << 20))
        # 2 double-buffered x tiles + in-kernel f32 widening + slack -> /4.
        target_tile_bytes = min(32 * 1024 * 1024, avail // 4)
        tile_n = max(1, target_tile_bytes // per_sample_bytes)
        # Keep >= 2 (ideally 4) grid steps on large batches so the "parallel"
        # batch axis can be sharded across both TensorCores on v7x.
        if N >= 32:
            tile_n = min(tile_n, max(8, ((N // 4) // 8) * 8))
        elif N >= 16:
            tile_n = min(tile_n, max(8, ((N // 2) // 8) * 8))

    tile_n = int(min(int(tile_n), N))
    if tile_n < N:
        # Output block is (tile_n, NC_PAD): keep its second-minor dim 8-aligned.
        tile_n = max(8, (tile_n // 8) * 8)
        if tile_n >= N:
            tile_n = N
    grid = (pl.cdiv(N, tile_n),)

    # ---- BN parameter folding (tiny, weight-sized, one-time JAX glue) ----
    if apply_bn_relu:
        eps = 1e-5
        inv_std = jax.lax.rsqrt(params["bn_running_var"].astype(jnp.float32) + eps)
        scale = params["bn_gamma"].astype(jnp.float32) * inv_std               # (C,)
        shift = (params["bn_beta"].astype(jnp.float32)
                 - params["bn_running_mean"].astype(jnp.float32) * scale)      # (C,)
        scale = scale.reshape(1, C, 1)
        shift = shift.reshape(1, C, 1)

    # ---- FC weight: (num_classes, C) -> (C, NC_PAD), 1/HW folded in, bf16 ----
    # (Cache these caller-side if the head is called repeatedly with the same params.)
    w = params["fc_w"].astype(jnp.float32).T * (1.0 / float(HW))                # (C, nc)
    w_pad = (jnp.zeros((C, NC_PAD), jnp.float32)
             .at[:, :num_classes].set(w).astype(fc_weight_dtype))
    b_pad = (jnp.zeros((1, NC_PAD), jnp.float32)
             .at[0, :num_classes].set(params["fc_b"].astype(jnp.float32)))

    # ---- BlockSpecs ----
    x_spec = pl.BlockSpec((tile_n, C, HW), lambda i: (i, 0, 0))
    vec_spec = _resident_spec((1, C, 1), lambda i: (0, 0, 0))
    w_spec = _resident_spec((C, NC_PAD), lambda i: (0, 0))
    b_spec = _resident_spec((1, NC_PAD), lambda i: (0, 0))
    out_spec = pl.BlockSpec((tile_n, NC_PAD), lambda i: (i, 0))

    if apply_bn_relu:
        in_specs = [x_spec, vec_spec, vec_spec, w_spec, b_spec]
        args = (x, scale, shift, w_pad, b_pad)
    else:
        in_specs = [x_spec, w_spec, b_spec]
        args = (x, w_pad, b_pad)

    out_padded = pl.pallas_call(
        functools.partial(_output_head_kernel, apply_bn_relu=apply_bn_relu),
        out_shape=jax.ShapeDtypeStruct((N, NC_PAD), jnp.float32),
        grid=grid,
        in_specs=in_specs,
        out_specs=out_spec,
        compiler_params=pltpu.CompilerParams(
            dimension_semantics=("parallel",),
            vmem_limit_bytes=vmem_limit,
        ),
    )(*args)

    return out_padded[:, :num_classes]


def _reference_forward(x_nchw, params, *, resnet_version: int):
    x = x_nchw.astype(jnp.float32)
    if resnet_version == 2:
        eps = 1e-5
        mean = params["bn_running_mean"][None, :, None, None]
        var = params["bn_running_var"][None, :, None, None]
        gamma = params["bn_gamma"][None, :, None, None]
        beta = params["bn_beta"][None, :, None, None]
        x = gamma * (x - mean) / jnp.sqrt(var + eps) + beta
        x = jnp.maximum(x, 0.0)
    pooled = jnp.mean(x, axis=(2, 3))                          # (N, C)
    return pooled @ params["fc_w"].T.astype(jnp.float32) + params["fc_b"]


if __name__ == "__main__":
    # Small, deterministic example shapes.
    N, C, H, W = 2, 4, 16, 16       # filters = C = 4
    num_classes = 10

    key = jax.random.PRNGKey(0)
    kx, kg, kb, km, kv, kw, kbias, kx2 = jax.random.split(key, 8)

    x = jax.random.normal(kx, (N, C, H, W), dtype=jnp.float32)

    params = {
        "bn_gamma": jax.random.normal(kg, (C,), dtype=jnp.float32) * 0.1 + 1.0,
        "bn_beta": jax.random.normal(kb, (C,), dtype=jnp.float32) * 0.1,
        "bn_running_mean": jax.random.normal(km, (C,), dtype=jnp.float32) * 0.1,
        "bn_running_var": jnp.abs(jax.random.normal(kv, (C,), dtype=jnp.float32)) + 0.5,
        "fc_w": jax.random.normal(kw, (num_classes, C), dtype=jnp.float32) * 0.1,
        "fc_b": jax.random.normal(kbias, (num_classes,), dtype=jnp.float32) * 0.1,
    }

    # resnet_version == 2 path (BN + ReLU + pool + FC), auto tile sizing.
    out = output_layer_forward(x, params, resnet_version=2)
    out = jax.block_until_ready(out)
    ref = _reference_forward(x, params, resnet_version=2)
    assert out.shape == (N, num_classes)
    # Tolerance reflects bf16 FC weights / bf16 MXU operands (f32 accumulate).
    assert jnp.allclose(out, ref, atol=1e-2, rtol=1e-2), "v2 mismatch vs reference"

    # resnet_version == 1 path (pool + FC only); multi-step grid with an
    # 8-aligned tile and a partial final batch block (N=12, tile_n=8).
    N2 = 12
    x2 = jax.random.normal(kx2, (N2, C, H, W), dtype=jnp.float32)
    out1 = output_layer_forward(x2, params, resnet_version=1, tile_n=8)
    out1 = jax.block_until_ready(out1)
    ref1 = _reference_forward(x2, params, resnet_version=1)
    assert out1.shape == (N2, num_classes)
    assert jnp.allclose(out1, ref1, atol=1e-2, rtol=1e-2), "v1 mismatch vs reference"

    print("KERNEL_OK")
</pallas_src>

<mosaic_0001>
module attributes {stable_mosaic.version = 11 : i64} {
  func.func @_output_head_kernel(%arg0: i32, %arg1: memref<2x4x256xf32, #tpu.memory_space<vmem>>, %arg2: memref<1x4x1xf32, #tpu.memory_space<vmem>>, %arg3: memref<1x4x1xf32, #tpu.memory_space<vmem>>, %arg4: memref<4x128xbf16, #tpu.memory_space<vmem>>, %arg5: memref<1x128xf32, #tpu.memory_space<vmem>>, %arg6: memref<2x128xf32, #tpu.memory_space<vmem>>) attributes {dimension_semantics = [#tpu.dimension_semantics<parallel>], iteration_bounds = array<i64: 1>, scalar_prefetch = 0 : i64, scratch_operands = 0 : i64, tpu.core_type = #tpu.core_type<tc>, window_params = [{transform_indices = @transform_0, window_bounds = array<i64: 2, 4, 256>}, {pipeline_mode = #tpu.pipeline_mode<synchronous>, transform_indices = @transform_1, window_bounds = array<i64: 1, 4, 1>}, {pipeline_mode = #tpu.pipeline_mode<synchronous>, transform_indices = @transform_2, window_bounds = array<i64: 1, 4, 1>}, {pipeline_mode = #tpu.pipeline_mode<synchronous>, transform_indices = @transform_3, window_bounds = array<i64: 4, 128>}, {pipeline_mode = #tpu.pipeline_mode<synchronous>, transform_indices = @transform_4, window_bounds = array<i64: 1, 128>}, {transform_indices = @transform_5, window_bounds = array<i64: 2, 128>}]} {
    %c0 = arith.constant 0 : index
    %c0_0 = arith.constant 0 : index
    %c0_1 = arith.constant 0 : index
    %0 = vector.load %arg1[%c0, %c0_0, %c0_1] : memref<2x4x256xf32, #tpu.memory_space<vmem>>, vector<2x4x256xf32>
    %c0_2 = arith.constant 0 : index
    %c0_3 = arith.constant 0 : index
    %c0_4 = arith.constant 0 : index
    %1 = vector.load %arg2[%c0_2, %c0_3, %c0_4] : memref<1x4x1xf32, #tpu.memory_space<vmem>>, vector<1x4x1xf32>
    %2 = vector.broadcast %1 : vector<1x4x1xf32> to vector<2x4x256xf32>
    %3 = arith.mulf %0, %2 : vector<2x4x256xf32>
    %c0_5 = arith.constant 0 : index
    %c0_6 = arith.constant 0 : index
    %c0_7 = arith.constant 0 : index
    %4 = vector.load %arg3[%c0_5, %c0_6, %c0_7] : memref<1x4x1xf32, #tpu.memory_space<vmem>>, vector<1x4x1xf32>
    %5 = vector.broadcast %4 : vector<1x4x1xf32> to vector<2x4x256xf32>
    %6 = arith.addf %3, %5 : vector<2x4x256xf32>
    %cst = arith.constant 0.000000e+00 : f32
    %7 = vector.broadcast %cst : f32 to vector<2x4x256xf32>
    %8 = arith.maximumf %6, %7 : vector<2x4x256xf32>
    %cst_8 = arith.constant dense<0.000000e+00> : vector<2x4xf32>
    %9 = vector.multi_reduction <add>, %8, %cst_8 [2] : vector<2x4x256xf32> to vector<2x4xf32>
    %10 = arith.truncf %9 : vector<2x4xf32> to vector<2x4xbf16>
    %c0_9 = arith.constant 0 : index
    %c0_10 = arith.constant 0 : index
    %11 = vector.load %arg4[%c0_9, %c0_10] : memref<4x128xbf16, #tpu.memory_space<vmem>>, vector<4x128xbf16>
    %cst_11 = arith.constant dense<0.000000e+00> : vector<2x128xf32>
    %12 = tpu.matmul %10, %11, %cst_11 {dimension_numbers = #tpu.dot_dimension_numbers<[1], [0], [0], [1], [0, 0, 1, 1], [], []>} : vector<2x4xbf16>, vector<4x128xbf16>, vector<2x128xf32> -> vector<2x128xf32>
    %c0_12 = arith.constant 0 : index
    %c0_13 = arith.constant 0 : index
    %13 = vector.load %arg5[%c0_12, %c0_13] : memref<1x128xf32, #tpu.memory_space<vmem>>, vector<1x128xf32>
    %14 = vector.broadcast %13 : vector<1x128xf32> to vector<2x128xf32>
    %15 = arith.addf %12, %14 : vector<2x128xf32>
    %c0_14 = arith.constant 0 : index
    %c0_15 = arith.constant 0 : index
    %16 = vector.load %arg6[%c0_14, %c0_15] : memref<2x128xf32, #tpu.memory_space<vmem>>, vector<2x128xf32>
    tpu.vector_store %arg6[%c0_14, %c0_15], %15 {strides = array<i32>} : memref<2x128xf32, #tpu.memory_space<vmem>>, vector<2x128xf32>,
    return
  }
  func.func @transform_0(%arg0: i32) -> (i32, i32, i32) {
    %c0_i32 = arith.constant 0 : i32
    %c0_i32_0 = arith.constant 0 : i32
    %c0_i32_1 = arith.constant 0 : i32
    return %arg0, %c0_i32, %c0_i32_0 : i32, i32, i32
  }
  func.func @transform_1(%arg0: i32) -> (i32, i32, i32) {
    %c0_i32 = arith.constant 0 : i32
    %c0_i32_0 = arith.constant 0 : i32
    %c0_i32_1 = arith.constant 0 : i32
    %c0_i32_2 = arith.constant 0 : i32
    return %c0_i32, %c0_i32_0, %c0_i32_1 : i32, i32, i32
  }
  func.func @transform_2(%arg0: i32) -> (i32, i32, i32) {
    %c0_i32 = arith.constant 0 : i32
    %c0_i32_0 = arith.constant 0 : i32
    %c0_i32_1 = arith.constant 0 : i32
    %c0_i32_2 = arith.constant 0 : i32
    return %c0_i32, %c0_i32_0, %c0_i32_1 : i32, i32, i32
  }
  func.func @transform_3(%arg0: i32) -> (i32, i32) {
    %c0_i32 = arith.constant 0 : i32
    %c0_i32_0 = arith.constant 0 : i32
    %c0_i32_1 = arith.constant 0 : i32
    return %c0_i32, %c0_i32_0 : i32, i32
  }
  func.func @transform_4(%arg0: i32) -> (i32, i32) {
    %c0_i32 = arith.constant 0 : i32
    %c0_i32_0 = arith.constant 0 : i32
    %c0_i32_1 = arith.constant 0 : i32
    return %c0_i32, %c0_i32_0 : i32, i32
  }
  func.func @transform_5(%arg0: i32) -> (i32, i32) {
    %c0_i32 = arith.constant 0 : i32
    %c0_i32_0 = arith.constant 0 : i32
    return %arg0, %c0_i32 : i32, i32
  }
}

</mosaic_0001>

<bundles_post_ra>
// kernel: tpu_custom_call.1
= control target key start
LH: loop header
LB: loop body
LE: loop exit
PB: predicated region body
PF: predicated region fallthrough
CT: control target
= control target key end

     0   :  { %10 = vsyncpa [#allocation3], 0  ;;  %s319_s0 = inlined_call_operand.hbm [shape: f32[2,4,256], index: 0, kind: input, shape index: {}]   ;;  %s320_s1 = inlined_call_operand.vmem [shape: f32[1,4,1], index: 1, kind: input, shape index: {}]   ;;  %s321_s2 = inlined_call_operand.vmem [shape: f32[1,4,1], index: 2, kind: input, shape index: {}]   ;;  %s322_s3 = inlined_call_operand.vmem [shape: bf16[4,128], index: 3, kind: input, shape index: {}]   ;;  %s323_s4 = inlined_call_operand.vmem [shape: f32[1,128], index: 4, kind: input, shape index: {}]   ;;  %s324_s5 = inlined_call_operand.hbm [shape: f32[2,128], index: 5, kind: output, shape index: {}]  }
   0x1   :  { %11 = vsyncpa [#allocation4], 0  ;;  %s245_s18 = smov [#allocation2]   ;;  %s197_s22 = scalar_lea.hbm %s319_s0, 256 }
   0x2   :  { %s17_s19 = sshll.u32 %s245_s18, 4  ;;  %p198_p0 = scmp.ne.s32.totalorder %s319_s0, %s197_s22  ;;  %s18_s19 = int_to_ptr.vmem [resolvable:$true] %s17_s19 }
   0x3   :  { %p201_p1 = scmp.lt.u32.totalorder %s197_s22, %s319_s0 }
   0x5   :  { %p203_p2 = pnand %p201_p1, %p198_p0 }
   0x7   :  { %206 = shalt.err (!%p203_p2)
}
   0x8   :  { %s207_s27 = scalar_lea.vmem %s18_s19, 256  ;;  %p212_p4 = scmp.lt.s32.totalorder %s18_s19, %s18_s19 }
   0x9   :  { %p208_p3 = scmp.ne.s32.totalorder %s18_s19, %s207_s27  ;;  %p213_p5 = scmp.lt.s32.totalorder %s207_s27, %s207_s27 }
   0xb   :  { %p214_p6 = por %p213_p5, %p212_p4 }
   0xd   :  { %p215_p7 = pnand %p214_p6, %p208_p3 }
   0xf   :  { %218 = shalt.err (!%p215_p7)
}
  0x10   :  { %s246_s28 = smov 128   ;;  %s247_s29 = smov 8  }
  0x11   :  { %23 = dma.hbm_to_vmem [thread:$0]  %s319_s0, 256, %s18_s19, [#allocation3], %s246_s28, %s246_s28, %s247_s29  }
  0x12   :  { %241 = dma.done.wait [#allocation3], 256  }
  0x13   :  { %242 = vsyncadd [#allocation3], 4294967040  ;;  %v248_v0 = vmov 0   ;;  %v38_v1 = vld [vmem:[%s320_s1] sm:$0xf]  ;;  %v46_v3 = vlaneseq  ;;  %v37_v14 = vld [vmem:[#allocation2 + $0x8] sm:$0xff] }
  0x14   :  { %196 = vset.pattern.permute.xlu0 %v248_v0  ;;  %v53_v2 = vld [vmem:[%s321_s2] sm:$0xf]  ;;  %v249_v7 = vmov 839922192   ;;  %vm76_vm0 = vcmask 1043456   ;;  %vm118_vm1 = vcmask 1041408  }
  0x15   :  { %41 = vperm.xlu0 %196, %v38_v1   ;;  %v47_v4 = vshrl.u32 %v46_v3, 7  ;;  %v102_v5 = vand.u32 127, %v46_v3  ;;  %v44_v8 = vunpack.c.l.s4 %v249_v7  ;;  %v36_v13 = vld [vmem:[#allocation2] sm:$0xff]  ;;  %v250_v32 = vmov 0.0   ;;  %s252_s11 = smov [#allocation5]  }
  0x16   :  { %v89_v31 = vld [vmem:[%s322_s3] sm:$0x3]  ;;  %182 = vmatprep.subr.bf16.mxu0 %v250_v32  ;;  %vm251_vm2 = vmmov 0   ;;  %vm111_vm3 = vcmask 1041409   ;;  %vm114_vm4 = vcmask 31744   ;;  %s169_s12 = sshll.u32 %s252_s11, 4  ;;  %s170_s12 = int_to_ptr.vmem [resolvable:$true] %s169_s12 }
  0x17   :  { %v105_v6 = vsub.s32 %v102_v5, %v47_v4  ;;  %v45_v9 = vunpack.c.0.s8 %v44_v8  ;;  %v120_v33 = vsel %vm118_vm1, %v89_v31, 0  ;;  %184 = vmatprep.mubr.msk.bf16.mxu0 %vm251_vm2, %v250_v32  ;;  %v178_v44 = vld [vmem:[%s323_s4] ss:$0 sm:$0xff]  ;;  %s219_s13 = scalar_lea.vmem %s170_s12, 32  ;;  %p224_p9 = scmp.lt.s32.totalorder %s170_s12, %s170_s12 }
  0x18   :  { %183 = vmatpush3.bf16.msra.mxu0 %v120_v33  ;;  %p220_p8 = scmp.ne.s32.totalorder %s170_s12, %s219_s13  ;;  %p225_p10 = scmp.lt.s32.totalorder %s219_s13, %s219_s13 }
  0x19   :  { %56 = vperm.xlu0 %196, %v53_v2   ;;  %v48_v10 = vsub.s32 %v45_v9, %v47_v4 }
  0x1a   :  { %p226_p11 = por %p225_p10, %p224_p9 }
  0x1c   :  { %p227_p12 = pnand %p226_p11, %p220_p8 }
  0x94   :  { %v42_v11 = vpop.permute.xlu0 %41 }
  0x95   :  { %v49_v12 = vrot.slane %v42_v11, %v48_v10 }
  0x97   :  { %v51_v16 = vmul.f32 %v49_v12, %v36_v13  ;;  %v52_v17 = vmul.f32 %v49_v12, %v37_v14 }
  0x98   :  { %v57_v15 = vpop.permute.xlu0 %56 }
  0x99   :  { %v64_v18 = vrot.slane %v57_v15, %v48_v10 }
  0x9b   :  { %v66_v19 = vadd.f32 %v64_v18, %v51_v16  ;;  %v67_v20 = vadd.f32 %v64_v18, %v52_v17 }
  0x9d   :  { %v69_v21 = vmax.f32 %v67_v20, 0.0  ;;  %v68_v22 = vmax.f32 %v66_v19, 0.0 }
  0x9f   :  { %v72_v23 = vcombine.high %v68_v22, %v68_v22  ;;  %v73_v24 = vcombine.high %v69_v21, %v69_v21  ;;  %v77_v25 = vsel %vm76_vm0, %v68_v22, 0.0  ;;  %v82_v29 = vsel %vm76_vm0, %v69_v21, 0.0 }
  0xa1   :  { %v78_v26 = vsel %vm76_vm0, %v72_v23, 0.0  ;;  %v83_v28 = vsel %vm76_vm0, %v73_v24, 0.0 }
  0xa2   :  { %v79_v27 = vadd.f32 %v78_v26, %v77_v25  ;;  %v84_v30 = vadd.f32 %v83_v28, %v82_v29 }
  0xa4   :  { %80 = vadd.xlane.f32.xlu1 %v79_v27 }
  0xa8   :  { %85 = vadd.xlane.f32.xlu1 %v84_v30 }
 0x131   :  { %v81_v34 = vpop.xlane.xlu1 %80 }
 0x132   :  { %v87_v35 = vpack.c.bf16 %v81_v34, %v81_v34 }
 0x134   :  { %v99_v37 = vunpack.c.l.b16 %v87_v35 }
 0x135   :  { %v86_v36 = vpop.xlane.xlu1 %85 }
 0x136   :  { %v88_v38 = vpack.c.bf16 %v86_v36, %v86_v36  ;;  %v106_v40 = vrot.slane %v99_v37, %v105_v6 }
 0x138   :  { %v100_v39 = vunpack.c.l.b16 %v88_v38 }
 0x13a   :  { %v110_v41 = vrot.slane %v100_v39, %v105_v6 }
 0x13c   :  { %v112_v42 = vsel %vm111_vm3, %v110_v41, %v106_v40 }
 0x13d   :  { %v113_v43 = vpack.c.b16 %v112_v42, %v112_v42 }
 0x13f   :  { %185 = vmatmul.mubr.msk.bf16.vlgmr.msra.gmra.mrb[0].mxu0 %vm114_vm4, %v113_v43 }
 0x212   :  { %v156_v45 = vpop.f32.mrb[0].mxu0 }
 0x213   :  { %v157_v46 = vadd.f32 %v178_v44, %v156_v45  ;;  %v186_v47 = vpop.f32.mrb[1].mxu0 }
 0x214   :  { %v159_v48 = vpop.f32.mrb[2].mxu0 }
 0x215   :  { %162 = vst [vmem:[#allocation5] sm:$0x3] %v157_v46  ;;  %v187_v49 = vpop.f32.mrb[3].mxu0 }
 0x216   :  { %230 = shalt.err (!%p227_p12)
}
 0x217   :  { %s231_s4 = scalar_lea.hbm %s324_s5, 32 }
 0x218   :  { %p232_p13 = scmp.ne.s32.totalorder %s324_s5, %s231_s4  ;;  %p235_p0 = scmp.lt.u32.totalorder %s231_s4, %s324_s5 }
 0x21a   :  { %p237_p1 = pnand %p235_p0, %p232_p13 }
 0x21c   :  { %240 = shalt.err (!%p237_p1)
}
 0x21d   :  { %172 = dma.vmem_to_hbm [thread:$0]  %s170_s12, 32, %s324_s5, [#allocation4]  }
 0x21e   :  { %243 = dma.done.wait [#allocation4], 32  }
 0x21f   :  { %244 = vsyncadd [#allocation4], 4294967264 }
 0x220   :  { %176 = vsyncpa [#allocation3], 1 }
 0x221   :  { %177 = vsyncpa [#allocation4], 1 }

</bundles_post_ra>
